<compile_context>
chip_gen: v6e
topology: v6e:2x2x1
jax: 0.10.0
libtpu: 0.0.40
codegen_flags: <defaults>
</compile_context>

<pallas_src>
import jax
import jax.numpy as jnp
import numpy as np
from jax.experimental import pallas as pl
from jax.experimental.pallas import tpu as pltpu

LANES = 128
SUBLANES = 8


def _round_up(v, m):
    return -(-v // m) * m


def _time2vec_kernel(params_ref, x_ref, out_ref):
    # params_ref: SMEM (2 + 2K,) f32  -> [wb, bb, wa[0..K-1], ba[0..K-1]]
    # x_ref:      VMEM (r_block, 128) lane-dense time values (f32)
    # out_ref:    VMEM (1+K, r_block, 128) channel-first output block
    x = x_ref[...]                                   # (r_block, 128), f32
    wb = params_ref[0]
    bb = params_ref[1]

    # Row 0: linear term — full-lane unmasked store; cast only at the store.
    out_ref[0] = (wb * x + bb).astype(out_ref.dtype)

    # Rows 1..K: periodic terms. K is small & static -> unrolled Python loop of
    # per-lane VPU FMAs + EUP sin; hidden under the output writeback (mem-bound).
    num_k = out_ref.shape[0] - 1
    for k in range(num_k):
        out_ref[k + 1] = jnp.sin(
            params_ref[2 + k] * x + params_ref[2 + num_k + k]
        ).astype(out_ref.dtype)


def _pick_r_block(r_rows, K, in_bytes, out_bytes):
    """VMEM-budget-derived row-block size (multiple of 8 sublanes).

    Per grid step the double-buffered footprint is
        2 * r_block * 128 * (in_bytes + (1 + K) * out_bytes).
    A ~12 MiB budget stays under v5e's 16 MiB default scoped-VMEM limit while
    giving 1024-2048 row tiles on v6e/v7x (the ~0.35 us/step overhead is fully
    amortized there).
    """
    vmem_budget = 12 << 20
    per_row = 2 * LANES * (in_bytes + (1 + K) * out_bytes)
    r_block = max(SUBLANES, (vmem_budget // per_row) // SUBLANES * SUBLANES)
    r_block = min(r_block, 2048)              # larger tiles stop paying off
    r_block = min(r_block, r_rows)            # never larger than the data

    # v7x shards the "parallel" grid axis over 2 TensorCores: once there is a
    # non-trivial amount of data (>= 256 rows), keep >= ~4 grid steps so
    # neither core idles.  Neutral on v5e/v6e (single TC, serial grid).
    min_steps = 4
    if r_rows >= min_steps * 64:
        r_block = min(r_block, _round_up(-(-r_rows // min_steps), SUBLANES))
    return max(r_block, SUBLANES)


def time2vec(x, wb, bb, wa, ba, *, out_dtype=None, channel_first=False,
             r_block=None):
    """Pallas TPU Time2Vec.

    x: (B, T, 1) float; wb, bb: (1,); wa, ba: (K,).
    Returns (B, T, 1+K) (PyTorch layout) by default.  `channel_first=True`
    returns (1+K, B, T) and skips the wrapper transpose — a full extra HBM
    pass over the output — for consumers that can take channel-first input.
    `out_dtype=jnp.bfloat16` halves output HBM traffic (compute stays in f32,
    cast happens only at the store).
    """
    B, T, F = x.shape
    assert F == 1, "expected time value on last axis (size 1)"
    K = int(wa.shape[0])
    N = B * T
    out_dtype = jnp.dtype(out_dtype) if out_dtype is not None else jnp.dtype(jnp.float32)

    # --- wrapper-side layout plumbing: fold N onto the 128-lane axis ---------
    # Pad only to one (8, 128) row-tile granularity; a non-divisible final grid
    # step is a Pallas-masked partial block (no full extra padding pass).
    R = -(-N // LANES)
    R8 = _round_up(R, SUBLANES)
    N_pad = R8 * LANES

    x_flat = x.reshape(-1).astype(jnp.float32)
    if N_pad != N:
        x_flat = jnp.pad(x_flat, (0, N_pad - N))
    x2 = x_flat.reshape(R8, LANES)                # lane-dense (R8, 128)

    if r_block is None:
        r_block = _pick_r_block(R8, K, 4, out_dtype.itemsize)
    grid = (-(-R8 // r_block),)

    # Single SMEM parameter vector: [wb, bb, wa..., ba...].
    params = jnp.concatenate(
        [wb.reshape(1), bb.reshape(1), wa.reshape(K), ba.reshape(K)]
    ).astype(jnp.float32)

    out = pl.pallas_call(
        _time2vec_kernel,
        out_shape=jax.ShapeDtypeStruct((1 + K, R8, LANES), out_dtype),
        grid=grid,
        in_specs=[
            pl.BlockSpec(memory_space=pltpu.MemorySpace.SMEM),   # params
            pl.BlockSpec((r_block, LANES), lambda i: (i, 0)),    # x tile
        ],
        out_specs=pl.BlockSpec((1 + K, r_block, LANES), lambda i: (0, i, 0)),
        compiler_params=pltpu.CompilerParams(
            dimension_semantics=("parallel",),
        ),
    )(params, x2)

    out = out.reshape(1 + K, N_pad)[:, :N]        # drop row-granularity padding
    if channel_first:
        return out.reshape(1 + K, B, T)
    # PyTorch layout: this transpose is a second full HBM pass over the output;
    # prefer channel_first=True when the downstream op can consume it directly.
    return out.T.reshape(B, T, 1 + K)


if __name__ == "__main__":
    key = jax.random.PRNGKey(0)
    k_x, k_wb, k_bb, k_wa, k_ba = jax.random.split(key, 5)

    B, T, K = 2, 8, 4  # batch, sequence length, Time2Vec kernel_size

    x = jax.random.normal(k_x, (B, T, 1), dtype=jnp.float32)
    wb = jax.random.normal(k_wb, (1,), dtype=jnp.float32)
    bb = jax.random.normal(k_bb, (1,), dtype=jnp.float32)
    wa = jax.random.normal(k_wa, (K,), dtype=jnp.float32)
    ba = jax.random.normal(k_ba, (K,), dtype=jnp.float32)

    # Pure-JAX reference (mirrors the PyTorch forward exactly).
    v_linear = wb[0] * x + bb[0]
    v_periodic = jnp.sin(x * wa + ba)
    ref = jnp.concatenate([v_linear, v_periodic], axis=-1)     # (B, T, 1+K)

    # PyTorch-layout path.
    out = jax.block_until_ready(time2vec(x, wb, bb, wa, ba))
    np.testing.assert_allclose(np.asarray(out), np.asarray(ref),
                               rtol=1e-6, atol=1e-6)

    # Transpose-free channel-first path (recommended for fused consumers).
    out_cf = jax.block_until_ready(time2vec(x, wb, bb, wa, ba, channel_first=True))
    ref_cf = jnp.moveaxis(ref, -1, 0)                          # (1+K, B, T)
    np.testing.assert_allclose(np.asarray(out_cf), np.asarray(ref_cf),
                               rtol=1e-6, atol=1e-6)

    print("KERNEL_OK")
</pallas_src>

<mosaic_0001>
module attributes {stable_mosaic.version = 11 : i64} {
  func.func @_time2vec_kernel(%arg0: i32, %arg1: memref<10xf32, #tpu.memory_space<smem>>, %arg2: memref<8x128xf32, #tpu.memory_space<vmem>>, %arg3: memref<5x8x128xf32, #tpu.memory_space<vmem>>) attributes {dimension_semantics = [#tpu.dimension_semantics<parallel>], iteration_bounds = array<i64: 1>, scalar_prefetch = 0 : i64, scratch_operands = 0 : i64, tpu.core_type = #tpu.core_type<tc>, window_params = [{transform_indices = @transform_0, window_bounds = array<i64: 10>}, {transform_indices = @transform_1, window_bounds = array<i64: 8, 128>}, {transform_indices = @transform_2, window_bounds = array<i64: 5, 8, 128>}]} {
    %c0 = arith.constant 0 : index
    %c0_0 = arith.constant 0 : index
    %0 = vector.load %arg2[%c0, %c0_0] : memref<8x128xf32, #tpu.memory_space<vmem>>, vector<8x128xf32>
    %c0_1 = arith.constant 0 : index
    %1 = memref.load %arg1[%c0_1] : memref<10xf32, #tpu.memory_space<smem>>
    %c1 = arith.constant 1 : index
    %2 = memref.load %arg1[%c1] : memref<10xf32, #tpu.memory_space<smem>>
    %3 = vector.broadcast %1 : f32 to vector<8x128xf32>
    %4 = arith.mulf %3, %0 : vector<8x128xf32>
    %5 = vector.broadcast %2 : f32 to vector<8x128xf32>
    %6 = arith.addf %4, %5 : vector<8x128xf32>
    %c0_2 = arith.constant 0 : index
    %c0_3 = arith.constant 0 : index
    %c0_4 = arith.constant 0 : index
    %7 = vector.load %arg3[%c0_2, %c0_3, %c0_4] : memref<5x8x128xf32, #tpu.memory_space<vmem>>, vector<1x8x128xf32>
    %8 = vector.shape_cast %7 : vector<1x8x128xf32> to vector<8x128xf32>
    %9 = vector.shape_cast %6 : vector<8x128xf32> to vector<1x8x128xf32>
    tpu.vector_store %arg3[%c0_2, %c0_3, %c0_4], %9 {strides = array<i32>} : memref<5x8x128xf32, #tpu.memory_space<vmem>>, vector<1x8x128xf32>,
    %c2 = arith.constant 2 : index
    %10 = memref.load %arg1[%c2] : memref<10xf32, #tpu.memory_space<smem>>
    %11 = vector.broadcast %10 : f32 to vector<8x128xf32>
    %12 = arith.mulf %11, %0 : vector<8x128xf32>
    %c6 = arith.constant 6 : index
    %13 = memref.load %arg1[%c6] : memref<10xf32, #tpu.memory_space<smem>>
    %14 = vector.broadcast %13 : f32 to vector<8x128xf32>
    %15 = arith.addf %12, %14 : vector<8x128xf32>
    %16 = math.sin %15 : vector<8x128xf32>
    %c1_5 = arith.constant 1 : index
    %c0_6 = arith.constant 0 : index
    %c0_7 = arith.constant 0 : index
    %17 = vector.load %arg3[%c1_5, %c0_6, %c0_7] : memref<5x8x128xf32, #tpu.memory_space<vmem>>, vector<1x8x128xf32>
    %18 = vector.shape_cast %17 : vector<1x8x128xf32> to vector<8x128xf32>
    %19 = vector.shape_cast %16 : vector<8x128xf32> to vector<1x8x128xf32>
    tpu.vector_store %arg3[%c1_5, %c0_6, %c0_7], %19 {strides = array<i32>} : memref<5x8x128xf32, #tpu.memory_space<vmem>>, vector<1x8x128xf32>,
    %c3 = arith.constant 3 : index
    %20 = memref.load %arg1[%c3] : memref<10xf32, #tpu.memory_space<smem>>
    %21 = vector.broadcast %20 : f32 to vector<8x128xf32>
    %22 = arith.mulf %21, %0 : vector<8x128xf32>
    %c7 = arith.constant 7 : index
    %23 = memref.load %arg1[%c7] : memref<10xf32, #tpu.memory_space<smem>>
    %24 = vector.broadcast %23 : f32 to vector<8x128xf32>
    %25 = arith.addf %22, %24 : vector<8x128xf32>
    %26 = math.sin %25 : vector<8x128xf32>
    %c2_8 = arith.constant 2 : index
    %c0_9 = arith.constant 0 : index
    %c0_10 = arith.constant 0 : index
    %27 = vector.load %arg3[%c2_8, %c0_9, %c0_10] : memref<5x8x128xf32, #tpu.memory_space<vmem>>, vector<1x8x128xf32>
    %28 = vector.shape_cast %27 : vector<1x8x128xf32> to vector<8x128xf32>
    %29 = vector.shape_cast %26 : vector<8x128xf32> to vector<1x8x128xf32>
    tpu.vector_store %arg3[%c2_8, %c0_9, %c0_10], %29 {strides = array<i32>} : memref<5x8x128xf32, #tpu.memory_space<vmem>>, vector<1x8x128xf32>,
    %c4 = arith.constant 4 : index
    %30 = memref.load %arg1[%c4] : memref<10xf32, #tpu.memory_space<smem>>
    %31 = vector.broadcast %30 : f32 to vector<8x128xf32>
    %32 = arith.mulf %31, %0 : vector<8x128xf32>
    %c8 = arith.constant 8 : index
    %33 = memref.load %arg1[%c8] : memref<10xf32, #tpu.memory_space<smem>>
    %34 = vector.broadcast %33 : f32 to vector<8x128xf32>
    %35 = arith.addf %32, %34 : vector<8x128xf32>
    %36 = math.sin %35 : vector<8x128xf32>
    %c3_11 = arith.constant 3 : index
    %c0_12 = arith.constant 0 : index
    %c0_13 = arith.constant 0 : index
    %37 = vector.load %arg3[%c3_11, %c0_12, %c0_13] : memref<5x8x128xf32, #tpu.memory_space<vmem>>, vector<1x8x128xf32>
    %38 = vector.shape_cast %37 : vector<1x8x128xf32> to vector<8x128xf32>
    %39 = vector.shape_cast %36 : vector<8x128xf32> to vector<1x8x128xf32>
    tpu.vector_store %arg3[%c3_11, %c0_12, %c0_13], %39 {strides = array<i32>} : memref<5x8x128xf32, #tpu.memory_space<vmem>>, vector<1x8x128xf32>,
    %c5 = arith.constant 5 : index
    %40 = memref.load %arg1[%c5] : memref<10xf32, #tpu.memory_space<smem>>
    %41 = vector.broadcast %40 : f32 to vector<8x128xf32>
    %42 = arith.mulf %41, %0 : vector<8x128xf32>
    %c9 = arith.constant 9 : index
    %43 = memref.load %arg1[%c9] : memref<10xf32, #tpu.memory_space<smem>>
    %44 = vector.broadcast %43 : f32 to vector<8x128xf32>
    %45 = arith.addf %42, %44 : vector<8x128xf32>
    %46 = math.sin %45 : vector<8x128xf32>
    %c4_14 = arith.constant 4 : index
    %c0_15 = arith.constant 0 : index
    %c0_16 = arith.constant 0 : index
    %47 = vector.load %arg3[%c4_14, %c0_15, %c0_16] : memref<5x8x128xf32, #tpu.memory_space<vmem>>, vector<1x8x128xf32>
    %48 = vector.shape_cast %47 : vector<1x8x128xf32> to vector<8x128xf32>
    %49 = vector.shape_cast %46 : vector<8x128xf32> to vector<1x8x128xf32>
    tpu.vector_store %arg3[%c4_14, %c0_15, %c0_16], %49 {strides = array<i32>} : memref<5x8x128xf32, #tpu.memory_space<vmem>>, vector<1x8x128xf32>,
    return
  }
  func.func @transform_0(%arg0: i32) -> i32 {
    %c0_i32 = arith.constant 0 : i32
    %c0_i32_0 = arith.constant 0 : i32
    return %c0_i32 : i32
  }
  func.func @transform_1(%arg0: i32) -> (i32, i32) {
    %c0_i32 = arith.constant 0 : i32
    %c0_i32_0 = arith.constant 0 : i32
    return %arg0, %c0_i32 : i32, i32
  }
  func.func @transform_2(%arg0: i32) -> (i32, i32, i32) {
    %c0_i32 = arith.constant 0 : i32
    %c0_i32_0 = arith.constant 0 : i32
    %c0_i32_1 = arith.constant 0 : i32
    return %c0_i32, %arg0, %c0_i32_0 : i32, i32, i32
  }
}

</mosaic_0001>

<bundles_post_ra>
// kernel: tpu_custom_call.1
= control target key start
LH: loop header
LB: loop body
LE: loop exit
PB: predicated region body
PF: predicated region fallthrough
CT: control target
= control target key end

     0   :  { %7 = vsyncpa [#allocation5], 0  ;;  %s929_s0 = inlined_call_operand.hbm [shape: f32[10], index: 0, kind: input, shape index: {}]   ;;  %s930_s1 = inlined_call_operand.hbm [shape: f32[8,128], index: 1, kind: input, shape index: {}]   ;;  %s931_s2 = inlined_call_operand.hbm [shape: f32[5,8,128], index: 2, kind: output, shape index: {}]  }
   0x1   :  { %8 = vsyncpa [#allocation3], 0 }
   0x2   :  { %9 = vsyncpa [#allocation4], 0  ;;  %s631_s9 = smov [#allocation2]   ;;  %s632_s12 = smov [#allocation6]  }
   0x3   :  { %17 = dma.hbm_to_smem %s929_s0, 16, %s631_s9, [#allocation5]  }
   0x4   :  { %s24_s13 = sshll.u32 %s632_s12, 4  ;;  %s25_s13 = int_to_ptr.vmem [resolvable:$true] %s24_s13 }
   0x5   :  { %s593_s14 = scalar_lea.vmem %s25_s13, 128  ;;  %p598_p1 = scmp.lt.s32.totalorder %s25_s13, %s25_s13 }
   0x6   :  { %p594_p0 = scmp.ne.s32.totalorder %s25_s13, %s593_s14  ;;  %p599_p2 = scmp.lt.s32.totalorder %s593_s14, %s593_s14 }
   0x8   :  { %p600_p3 = por %p599_p2, %p598_p1 }
   0xa   :  { %p601_p4 = pnand %p600_p3, %p594_p0 }
   0xc   :  { %604 = shalt.err (!%p601_p4)
}
   0xd   :  { %27 = dma.hbm_to_vmem [thread:$0]  %s930_s1, 128, %s25_s13, [#allocation3]  }
   0xe   :  { %625 = dma.done.wait [#allocation5], 16  }
   0xf   :  { %626 = vsyncadd [#allocation5], 4294967280 }
  0x10   :  { %627 = dma.done.wait [#allocation3], 128  }
  0x11   :  { %628 = vsyncadd [#allocation3], 4294967168 }
  0x12   :  { %34 = sfence }
  0x13   :  { %s36_s0 = sld [smem:[#allocation2]]  ;;  %v35_v0 = vld [vmem:[#allocation6] sm:$0xff]  ;;  %v633_v43 = vmov 683565275   ;;  %v634_v45 = vmov 2475754826  }
  0x14   :  { %s509_s17 = sld [smem:[#allocation2 + $0x1]]  ;;  %v635_v47 = vmov 2131351028   ;;  %v636_v49 = vmov 2102212464   ;;  %s639_s25 = smov [#allocation7]  }
  0x15   :  { %s510_s18 = sld [smem:[#allocation2 + $0x2]]  ;;  %v637_v51 = vmov 920167782   ;;  %v638_v58 = vmov 1326507024   ;;  %s496_s26 = sshll.u32 %s639_s25, 4  ;;  %s497_s26 = int_to_ptr.vmem [resolvable:$true] %s496_s26 }
  0x16   :  { %s511_s19 = sld [smem:[#allocation2 + $0x6]]  ;;  %s605_s27 = scalar_lea.vmem %s497_s26, 640 }
  0x17   :  { %s516_s20 = sld [smem:[#allocation2 + $0x3]]  ;;  %p606_p5 = scmp.ne.s32.totalorder %s497_s26, %s605_s27 }
  0x18   :  { %s517_s21 = sld [smem:[#allocation2 + $0x7]]  ;;  %p610_p6 = scmp.lt.s32.totalorder %s497_s26, %s497_s26 }
  0x19   :  { %v38_v1 = vstv %s36_s0  ;;  %s522_s22 = sld [smem:[#allocation2 + $0x4]]  ;;  %p611_p7 = scmp.lt.s32.totalorder %s605_s27, %s605_s27 }
  0x1a   :  { %v39_v2 = vmul.f32 %v38_v1, %v35_v0  ;;  %v40_v3 = vstv %s509_s17  ;;  %s523_s23 = sld [smem:[#allocation2 + $0x8]] }
  0x1b   :  { %v44_v4 = vstv %s510_s18  ;;  %s528_s24 = sld [smem:[#allocation2 + $0x5]]  ;;  %p612_p8 = por %p611_p7, %p610_p6 }
  0x1c   :  { %v41_v5 = vadd.f32 %v40_v3, %v39_v2  ;;  %v45_v6 = vmul.f32 %v44_v4, %v35_v0  ;;  %v47_v7 = vstv %s511_s19  ;;  %s529_s1 = sld [smem:[#allocation2 + $0x9]] }
  0x1d   :  { %v156_v8 = vstv %s516_s20  ;;  %p613_p9 = pnand %p612_p8, %p606_p5 }
  0x1e   :  { %42 = vst [vmem:[#allocation7] sm:$0xff] %v41_v5  ;;  %v663_v9 = vadd.f32 %v47_v7, %v45_v6  ;;  %v157_v10 = vmul.f32 %v156_v8, %v35_v0  ;;  %v159_v11 = vstv %s517_s21 }
  0x1f   :  { %v268_v12 = vstv %s522_s22 }
  0x20   :  { %v49_v13 = vand.u32 2147483647, %v663_v9  ;;  %v52_v14 = vand.u32 2139095040, %v663_v9  ;;  %v667_v15 = vadd.f32 %v159_v11, %v157_v10  ;;  %v269_v16 = vmul.f32 %v268_v12, %v35_v0 }
  0x21   :  { %v271_v17 = vstv %s523_s23  ;;  %v380_v22 = vstv %s528_s24  ;;  %vm51_vm13 = vcmp.lt.s32.totalorder %v663_v9, 0 }
  0x22   :  { %v53_v18 = vshrl.u32 %v52_v14, 23  ;;  %v56_v19 = vand.u32 8388607, %v49_v13  ;;  %v161_v20 = vand.u32 2147483647, %v667_v15  ;;  %v164_v21 = vand.u32 2139095040, %v667_v15 }
  0x23   :  { %v673_v24 = vadd.f32 %v271_v17, %v269_v16  ;;  %v381_v29 = vmul.f32 %v380_v22, %v35_v0  ;;  %v383_v33 = vstv %s529_s1 }
  0x24   :  { %v512_v23 = vadd.s32 4294967169, %v53_v18  ;;  %v165_v25 = vshrl.u32 %v164_v21, 23  ;;  %v168_v26 = vand.u32 8388607, %v161_v20  ;;  %v57_v27 = vor.u32 8388608, %v56_v19 }
  0x25   :  { %v276_v32 = vand.u32 2139095040, %v673_v24  ;;  %v678_v38 = vadd.f32 %v383_v33, %v381_v29 }
  0x26   :  { %v59_v28 = vadd.s32 1, %v512_v23  ;;  %v518_v30 = vadd.s32 4294967169, %v165_v25  ;;  %v169_v31 = vor.u32 8388608, %v168_v26  ;;  %v680_v39 = vshll.u32 %v57_v27, 8 }
  0x27   :  { %v684_v41 = vshrl.u32 %v276_v32, 23 }
  0x28   :  { %vm60_vm0 = vcmp.gt.s32.totalorder %v59_v28, 0  ;;  %v171_v35 = vadd.s32 1, %v518_v30  ;;  %v682_v40 = vshll.u32 %v169_v31, 8 }
  0x29   :  { %v61_v34 = vsel %vm60_vm0, %v59_v28, 0 }
  0x2a   :  { %v62_v36 = vshrl.u32 %v61_v34, 5  ;;  %v63_v37 = vand.u32 31, %v61_v34  ;;  %vm172_vm1 = vcmp.gt.s32.totalorder %v171_v35, 0 }
  0x2b   :  { %v173_v63 = vsel %vm172_vm1, %v171_v35, 0 }
  0x2c   :  { %v64_v42 = vsub.s32 32, %v63_v37  ;;  %v66_v44 = vshll.u32 %v633_v43, %v63_v37  ;;  %v69_v46 = vshll.u32 %v634_v45, %v63_v37  ;;  %v72_v48 = vshll.u32 %v635_v47, %v63_v37 }
  0x2d   :  { %v75_v50 = vshll.u32 %v636_v49, %v63_v37  ;;  %v78_v52 = vshll.u32 %v637_v51, %v63_v37  ;;  %vm81_vm2 = vcmp.lt.s32.totalorder %v62_v36, 1  ;;  %vm82_vm3 = vcmp.lt.s32.totalorder %v62_v36, 2 }
  0x2e   :  { %v65_v53 = vshrl.u32 %v633_v43, %v64_v42  ;;  %v67_v54 = vshrl.u32 %v634_v45, %v64_v42  ;;  %v70_v55 = vshrl.u32 %v635_v47, %v64_v42  ;;  %v73_v56 = vshrl.u32 %v636_v49, %v64_v42 }
  0x2f   :  { %v76_v57 = vshrl.u32 %v637_v51, %v64_v42  ;;  %v79_v59 = vshrl.u32 %v638_v58, %v64_v42  ;;  %vm83_vm4 = vcmp.lt.s32.totalorder %v62_v36, 3  ;;  %vm84_vm5 = vcmp.lt.s32.totalorder %v62_v36, 4 }
  0x30   :  { %v68_v60 = vor.u32 %v67_v54, %v66_v44  ;;  %v71_v61 = vor.u32 %v70_v55, %v69_v46  ;;  %v74_v62 = vor.u32 %v73_v56, %v72_v48  ;;  %v174_v2 = vshrl.u32 %v173_v63, 5 }
  0x31   :  { %v77_v0 = vor.u32 %v76_v57, %v75_v50  ;;  %v80_v1 = vor.u32 %v79_v59, %v78_v52  ;;  %v175_v3 = vand.u32 31, %v173_v63  ;;  %v524_v48 = vadd.s32 4294967169, %v684_v41 }
  0x32   :  { %v85_v4 = vsel %vm81_vm2, %v65_v53, %v68_v60  ;;  %v86_v5 = vsel %vm84_vm5, %v74_v62, 2102212464  ;;  %v89_v6 = vsel %vm81_vm2, %v68_v60, %v71_v61  ;;  %v93_v7 = vsel %vm81_vm2, %v71_v61, %v74_v62 }
  0x33   :  { %v87_v8 = vsel %vm83_vm4, %v71_v61, %v86_v5  ;;  %v90_v10 = vsel %vm84_vm5, %v77_v0, 920167782  ;;  %v94_v11 = vsel %vm84_vm5, %v80_v1, 1326507024  ;;  %v176_v12 = vsub.s32 32, %v175_v3 }
  0x34   :  { %v88_v14 = vsel %vm82_vm3, %v85_v4, %v87_v8  ;;  %v91_v16 = vsel %vm83_vm4, %v74_v62, %v90_v10  ;;  %v95_v17 = vsel %vm83_vm4, %v77_v0, %v94_v11  ;;  %v178_v18 = vshll.u32 %v633_v43, %v175_v3 }
  0x35   :  { %v92_v19 = vsel %vm82_vm3, %v89_v6, %v91_v16  ;;  %v96_v21 = vsel %vm82_vm3, %v93_v7, %v95_v17  ;;  %v104_v22 = vmul.u32 %v680_v39, %v88_v14  ;;  %v177_v23 = vshrl.u32 %v633_v43, %v176_v12 }
  0x36   :  { %v711_v25 = vmul.u32.u64.low %v680_v39, %v96_v21  ;;  %v712_v26 = vmul.u32.u64.high %v680_v39, %v96_v21, %v711_v25  ;;  %v715_v27 = vmul.u32.u64.low %v680_v39, %v92_v19  ;;  %v716_v28 = vmul.u32.u64.high %v680_v39, %v92_v19, %v715_v27 }
  0x37   :  { %v179_v29 = vshrl.u32 %v634_v45, %v176_v12  ;;  %v181_v30 = vshll.u32 %v634_v45, %v175_v3  ;;  %v182_v31 = vshrl.u32 %v635_v47, %v176_v12  ;;  %v184_v32 = vshll.u32 %v635_v47, %v175_v3 }
  0x38   :  { %v185_v33 = vshrl.u32 %v636_v49, %v176_v12  ;;  %v187_v34 = vshll.u32 %v636_v49, %v175_v3  ;;  %v188_v35 = vshrl.u32 %v637_v51, %v176_v12  ;;  %v190_v36 = vshll.u32 %v637_v51, %v175_v3 }
  0x39   :  { %v180_v37 = vor.u32 %v179_v29, %v178_v18  ;;  %v183_v39 = vor.u32 %v182_v31, %v181_v30  ;;  %v191_v42 = vshrl.u32 %v638_v58, %v176_v12  ;;  %vm193_vm6 = vcmp.lt.s32.totalorder %v174_v2, 1 }
  0x3a   :  { %vm106_vm7 = vc.u32 %v712_v26, %v715_v27  ;;  %v107_v44 = vadd.s32 1, %v716_v28  ;;  %v186_v46 = vor.u32 %v185_v33, %v184_v32  ;;  %v189_v50 = vor.u32 %v188_v35, %v187_v34 }
  0x3b   :  { %v192_v52 = vor.u32 %v191_v42, %v190_v36  ;;  %vm194_vm8 = vcmp.lt.s32.totalorder %v174_v2, 2  ;;  %vm195_vm9 = vcmp.lt.s32.totalorder %v174_v2, 3  ;;  %vm196_vm10 = vcmp.lt.s32.totalorder %v174_v2, 4 }
  0x3c   :  { %v108_v53 = vsel %vm106_vm7, %v107_v44, %v716_v28  ;;  %v197_v54 = vsel %vm193_vm6, %v177_v23, %v180_v37  ;;  %v201_v55 = vsel %vm193_vm6, %v180_v37, %v183_v39  ;;  %v198_v57 = vsel %vm196_vm10, %v186_v46, 2102212464 }
  0x3d   :  { %v109_v56 = vadd.s32 %v108_v53, %v104_v22  ;;  %v202_v59 = vsel %vm196_vm10, %v189_v50, 920167782  ;;  %v205_v60 = vsel %vm193_vm6, %v183_v39, %v186_v46  ;;  %v199_v61 = vsel %vm195_vm9, %v183_v39, %v198_v57 }
  0x3e   :  { %v203_v62 = vsel %vm195_vm9, %v186_v46, %v202_v59  ;;  %v206_v63 = vsel %vm196_vm10, %v192_v52, 1326507024  ;;  %v283_v41 = vadd.s32 1, %v524_v48  ;;  %v273_v4 = vand.u32 2147483647, %v673_v24 }
  0x3f   :  { %v110_v0 = vadd.s32 536870912, %v109_v56  ;;  %v204_v1 = vsel %vm194_vm8, %v201_v55, %v203_v62  ;;  %v207_v3 = vsel %vm195_vm9, %v189_v50, %v206_v63  ;;  %v200_v5 = vsel %vm194_vm8, %v197_v54, %v199_v61 }
  0x40   :  { %v208_v6 = vsel %vm194_vm8, %v205_v60, %v207_v3  ;;  %v741_v7 = vmul.u32.u64.low %v682_v40, %v204_v1  ;;  %v742_v8 = vmul.u32.u64.high %v682_v40, %v204_v1, %v741_v7  ;;  %vm284_vm11 = vcmp.gt.s32.totalorder %v283_v41, 0 }
  0x41   :  { %v111_v10 = vshrl.u32 %v110_v0, 30  ;;  %v746_v11 = vmul.u32.u64.low %v682_v40, %v208_v6  ;;  %v747_v12 = vmul.u32.u64.high %v682_v40, %v208_v6, %v746_v11  ;;  %v285_v14 = vsel %vm284_vm11, %v283_v41, 0 }
  0x42   :  { %v216_v17 = vmul.u32 %v682_v40, %v200_v5  ;;  %v287_v18 = vand.u32 31, %v285_v14  ;;  %v219_v19 = vadd.s32 1, %v742_v8  ;;  %v280_v2 = vand.u32 8388607, %v273_v4 }
  0x43   :  { %v112_v16 = vshll.u32 %v111_v10, 30  ;;  %v388_v21 = vand.u32 2139095040, %v678_v38  ;;  %vm218_vm12 = vc.u32 %v747_v12, %v741_v7  ;;  %v135_v40 = vsub.s32 4, %v111_v10 }
  0x44   :  { %v220_v23 = vsel %vm218_vm12, %v219_v19, %v742_v8  ;;  %v288_v25 = vsub.s32 32, %v287_v18  ;;  %v281_v30 = vor.u32 8388608, %v280_v2  ;;  %v286_v34 = vshrl.u32 %v285_v14, 5 }
  0x45   :  { %v113_v22 = vsub.s32 %v109_v56, %v112_v16  ;;  %v221_v29 = vadd.s32 %v220_v23, %v216_v17  ;;  %v389_v31 = vshrl.u32 %v388_v21, 23  ;;  %v290_v35 = vshll.u32 %v633_v43, %v287_v18 }
  0x46   :  { %v291_v36 = vshrl.u32 %v634_v45, %v288_v25  ;;  %v293_v37 = vshll.u32 %v634_v45, %v287_v18  ;;  %v294_v39 = vshrl.u32 %v635_v47, %v288_v25  ;;  %v296_v42 = vshll.u32 %v635_v47, %v287_v18 }
  0x47   :  { %v115_v28 = vsub.s32 0, %v113_v22  ;;  %v222_v33 = vadd.s32 536870912, %v221_v29  ;;  %v297_v46 = vshrl.u32 %v636_v49, %v288_v25  ;;  %v299_v48 = vshll.u32 %v636_v49, %v287_v18 }
  0x48   :  { %v300_v50 = vshrl.u32 %v637_v51, %v288_v25  ;;  %v105_v52 = vadd.s32 %v715_v27, %v712_v26  ;;  %v302_v54 = vshll.u32 %v637_v51, %v287_v18  ;;  %v771_v55 = vshll.u32 %v281_v30, 8 }
  0x49   :  { %v513_v32 = vmin.u32 %v115_v28, %v113_v22  ;;  %v768_v53 = vshrl.u32 %v222_v33, 30  ;;  %v136_v57 = vsel %vm51_vm13, %v135_v40, %v111_v10  ;;  %v303_v59 = vshrl.u32 %v638_v58, %v288_v25 }
  0x4a   :  { %v530_v60 = vadd.s32 4294967169, %v389_v31  ;;  %v289_v62 = vshrl.u32 %v633_v43, %v288_v25  ;;  %v292_v63 = vor.u32 %v291_v36, %v290_v35  ;;  %v295_v41 = vor.u32 %v294_v39, %v293_v37 }
  0x4b   :  { %v117_v44 = vclz %v513_v32  ;;  %v224_v61 = vshll.u32 %v768_v53, 30  ;;  %v298_v26 = vor.u32 %v297_v46, %v296_v42  ;;  %v301_v27 = vor.u32 %v300_v50, %v299_v48 }
  0x4c   :  { %vm305_vm15 = vcmp.lt.s32.totalorder %v286_v34, 1  ;;  %v304_v3 = vor.u32 %v303_v59, %v302_v54  ;;  %vm308_vm0 = vcmp.lt.s32.totalorder %v286_v34, 4  ;;  %vm307_vm1 = vcmp.lt.s32.totalorder %v286_v34, 3 }
  0x4d   :  { %v514_v56 = vadd.s32 4294967294, %v117_v44  ;;  %v778_v1 = vsub.s32 %v221_v29, %v224_v61  ;;  %vm306_vm2 = vcmp.lt.s32.totalorder %v286_v34, 2  ;;  %v309_v11 = vsel %vm305_vm15, %v289_v62, %v292_v63 }
  0x4e   :  { %v310_v14 = vsel %vm308_vm0, %v298_v26, 2102212464  ;;  %v313_v18 = vsel %vm305_vm15, %v292_v63, %v295_v41  ;;  %v314_v19 = vsel %vm308_vm0, %v301_v27, 920167782  ;;  %v318_v23 = vsel %vm308_vm0, %v304_v3, 1326507024 }
  0x4f   :  { %vm515_vm14 = vcmp.lt.s32.totalorder %v514_v56, 0  ;;  %v227_v10 = vsub.s32 0, %v778_v1  ;;  %v315_v21 = vsel %vm307_vm1, %v298_v26, %v314_v19  ;;  %v311_v29 = vsel %vm307_vm1, %v295_v41, %v310_v14 }
  0x50   :  { %v120_v0 = vsel %vm515_vm14, 0, %v514_v56  ;;  %v319_v40 = vsel %vm307_vm1, %v301_v27, %v318_v23  ;;  %vm793_vm3 = vcmp.le.f32.partialorder %v49_v13, 0.7853982  ;;  %v316_v32 = vsel %vm306_vm2, %v313_v18, %v315_v21 }
  0x51   :  { %v121_v5 = vsub.s32 32, %v120_v0  ;;  %v122_v6 = vshll.u32 %v113_v22, %v120_v0  ;;  %v125_v8 = vsub.s32 4294967266, %v120_v0  ;;  %v519_v2 = vmin.u32 %v227_v10, %v778_v1 }
  0x52   :  { %v317_v22 = vsel %vm305_vm15, %v295_v41, %v298_v26  ;;  %v138_v36 = vsel %vm793_vm3, 0, %v136_v57  ;;  %v312_v42 = vsel %vm306_vm2, %v309_v11, %v311_v29  ;;  %v217_v56 = vadd.s32 %v741_v7, %v747_v12 }
  0x53   :  { %v123_v16 = vshrl.u32 %v105_v52, %v121_v5  ;;  %v126_v17 = vadd.s32 127, %v125_v8  ;;  %v229_v31 = vclz %v519_v2  ;;  %v320_v37 = vsel %vm306_vm2, %v317_v22, %v319_v40 }
  0x54   :  { %v803_v44 = vmul.u32.u64.low %v771_v55, %v320_v37  ;;  %v804_v46 = vmul.u32.u64.high %v771_v55, %v320_v37, %v803_v44  ;;  %v807_v48 = vmul.u32.u64.low %v771_v55, %v316_v32  ;;  %v808_v50 = vmul.u32.u64.high %v771_v55, %v316_v32, %v807_v48 }
  0x55   :  { %v124_v25 = vor.u32 %v123_v16, %v122_v6  ;;  %v127_v28 = vshll.u32 %v126_v17, 23  ;;  %v520_v39 = vadd.s32 4294967294, %v229_v31  ;;  %v395_v52 = vadd.s32 1, %v530_v60 }
  0x56   :  { %v142_v54 = vadd.s32 3, %v138_v36  ;;  %v385_v57 = vand.u32 2147483647, %v678_v38  ;;  %v247_v61 = vsub.s32 4, %v768_v53  ;;  %v328_v26 = vmul.u32 %v771_v55, %v312_v42 }
  0x57   :  { %v128_v33 = vor.u32 4788187, %v127_v28  ;;  %v131_v35 = vcvt.s32.f32 %v124_v25  ;;  %vm521_vm4 = vcmp.lt.s32.totalorder %v520_v39, 0  ;;  %vm396_vm5 = vcmp.gt.s32.totalorder %v395_v52, 0 }
  0x58   :  { %v232_v59 = vsel %vm521_vm4, 0, %v520_v39  ;;  %vm330_vm6 = vc.u32 %v804_v46, %v807_v48  ;;  %v331_v7 = vadd.s32 1, %v808_v50  ;;  %v397_v12 = vsel %vm396_vm5, %v395_v52, 0 }
  0x59   :  { %v129_v13 = vand.u32 2147483647, %v128_v33  ;;  %v233_v62 = vsub.s32 32, %v232_v59  ;;  %v234_v63 = vshll.u32 %v778_v1, %v232_v59  ;;  %v237_v41 = vsub.s32 4294967266, %v232_v59 }
  0x5a   :  { %v399_v3 = vand.u32 31, %v397_v12  ;;  %vm163_vm7 = vcmp.lt.s32.totalorder %v667_v15, 0  ;;  %v332_v1 = vsel %vm330_vm6, %v331_v7, %v808_v50  ;;  %v392_v55 = vand.u32 8388607, %v385_v57 }
  0x5b   :  { %v132_v34 = vmul.f32 %v131_v35, %v129_v13  ;;  %v235_v60 = vshrl.u32 %v217_v56, %v233_v62  ;;  %v238_v0 = vadd.s32 127, %v237_v41  ;;  %v333_v11 = vadd.s32 %v332_v1, %v328_v26 }
  0x5c   :  { %v829_v14 = vand.u32 3, %v142_v54  ;;  %v248_v16 = vsel %vm163_vm7, %v247_v61, %v768_v53  ;;  %v400_v17 = vsub.s32 32, %v399_v3  ;;  %v834_v21 = vshrl.u32 %v397_v12, 5 }
  0x5d   :  { %v133_v27 = vxor.u32 2147483648, %v132_v34  ;;  %v236_v8 = vor.u32 %v235_v60, %v234_v63  ;;  %v239_v10 = vshll.u32 %v238_v0, 23  ;;  %v334_v2 = vadd.s32 536870912, %v333_v11 }
  0x5e   :  { %v402_v22 = vshll.u32 %v633_v43, %v399_v3  ;;  %v403_v23 = vshrl.u32 %v634_v45, %v400_v17  ;;  %v405_v25 = vshll.u32 %v634_v45, %v399_v3  ;;  %v406_v40 = vshrl.u32 %v635_v47, %v400_v17 }
  0x5f   :  { %v134_v5 = vsel %vm51_vm13, %v133_v27, %v132_v34  ;;  %v240_v18 = vor.u32 4788187, %v239_v10  ;;  %v243_v19 = vcvt.s32.f32 %v236_v8  ;;  %v839_v29 = vshrl.u32 %v334_v2, 30 }
  0x60   :  { %v137_v6 = vsel %vm793_vm3, %v663_v9, %v134_v5  ;;  %v411_v53 = vshll.u32 %v636_v49, %v399_v3  ;;  %v408_v30 = vshll.u32 %v635_v47, %v399_v3  ;;  %v409_v31 = vshrl.u32 %v636_v49, %v400_v17 }
  0x61   :  { %561 = vcosq.f32 %v137_v6  ;;  %v241_v28 = vand.u32 2147483647, %v240_v18  ;;  %v412_v32 = vshrl.u32 %v637_v51, %v400_v17  ;;  %v414_v33 = vshll.u32 %v637_v51, %v399_v3 }
  0x62   :  { %563 = vsinq.f32 %v137_v6  ;;  %vm849_vm8 = vcmp.le.f32.partialorder %v161_v20, 0.7853982  ;;  %v336_v36 = vshll.u32 %v839_v29, 30  ;;  %vm145_vm9 = vcmp.eq.s32.totalorder %v829_v14, 0 }
  0x63   :  { %v244_v45 = vmul.f32 %v243_v19, %v241_v28  ;;  %v250_v47 = vsel %vm849_vm8, 0, %v248_v16  ;;  %v393_v37 = vor.u32 8388608, %v392_v55  ;;  %v413_v49 = vor.u32 %v412_v32, %v411_v53 }
  0x64   :  { %v415_v39 = vshrl.u32 %v638_v58, %v400_v17  ;;  %vm144_vm10 = vcmp.lt.s32.totalorder %v829_v14, 2  ;;  %v337_v42 = vsub.s32 %v333_v11, %v336_v36  ;;  %v404_v20 = vor.u32 %v403_v23, %v402_v22 }
  0x65   :  { %v245_v51 = vxor.u32 2147483648, %v244_v45  ;;  %v407_v44 = vor.u32 %v406_v40, %v405_v25  ;;  %vm141_vm11 = vweird.f32 %v663_v9  ;;  %v410_v13 = vor.u32 %v409_v31, %v408_v30 }
  0x66   :  { %v416_v50 = vor.u32 %v415_v39, %v414_v33  ;;  %vm417_vm12 = vcmp.lt.s32.totalorder %v834_v21, 1  ;;  %vm420_vm13 = vcmp.lt.s32.totalorder %v834_v21, 4  ;;  %v339_v54 = vsub.s32 0, %v337_v42 }
  0x67   :  { %v246_v52 = vsel %vm163_vm7, %v245_v51, %v244_v45  ;;  %v401_v58 = vshrl.u32 %v633_v43, %v400_v17  ;;  %vm419_vm14 = vcmp.lt.s32.totalorder %v834_v21, 3  ;;  %v422_v34 = vsel %vm420_vm13, %v410_v13, 2102212464 }
  0x68   :  { %v249_v56 = vsel %vm849_vm8, %v667_v15, %v246_v52  ;;  %v426_v59 = vsel %vm420_vm13, %v413_v49, 920167782  ;;  %v433_v61 = vshll.u32 %v393_v37, 8  ;;  %v525_v62 = vmin.u32 %v339_v54, %v337_v42 }
  0x69   :  { %565 = vcosq.f32 %v249_v56  ;;  %vm418_vm15 = vcmp.lt.s32.totalorder %v834_v21, 2  ;;  %v425_v43 = vsel %vm417_vm12, %v404_v20, %v407_v44  ;;  %v427_v63 = vsel %vm419_vm14, %v410_v13, %v426_v59 }
  0x6a   :  { %567 = vsinq.f32 %v249_v56  ;;  %v429_v41 = vsel %vm417_vm12, %v407_v44, %v410_v13  ;;  %v430_v26 = vsel %vm420_vm13, %v416_v50, 1326507024  ;;  %vm148_vm0 = vcmp.eq.s32.totalorder %v829_v14, 2 }
  0x6b   :  { %v341_v7 = vclz %v525_v62  ;;  %v421_v12 = vsel %vm417_vm12, %v401_v58, %v404_v20  ;;  %v423_v60 = vsel %vm419_vm14, %v407_v44, %v422_v34  ;;  %v254_v5 = vadd.s32 3, %v250_v47 }
  0x6c   :  { %v428_v1 = vsel %vm418_vm15, %v425_v43, %v427_v63  ;;  %v431_v55 = vsel %vm419_vm14, %v413_v49, %v430_v26  ;;  %v329_v8 = vadd.s32 %v807_v48, %v804_v46  ;;  %v424_v17 = vsel %vm418_vm15, %v421_v12, %v423_v60 }
  0x6d   :  { %v526_v10 = vadd.s32 4294967294, %v341_v7  ;;  %v432_v11 = vsel %vm418_vm15, %v429_v41, %v431_v55  ;;  %v902_v22 = vmul.u32.u64.low %v433_v61, %v428_v1  ;;  %v903_v23 = vmul.u32.u64.high %v433_v61, %v428_v1, %v902_v22 }
  0x6e   :  { %v562_v27 = vpop.eup %561  ;;  %v897_v18 = vmul.u32.u64.low %v433_v61, %v432_v11  ;;  %v898_v19 = vmul.u32.u64.high %v433_v61, %v432_v11, %v897_v18  ;;  %v255_v53 = vand.u32 3, %v254_v5  ;;  %v440_v30 = vmul.u32 %v433_v61, %v424_v17 }
  0x6f   :  { %v564_v0 = vpop.eup %563  ;;  %v149_v3 = vxor.u32 2147483648, %v562_v27  ;;  %vm527_vm1 = vcmp.lt.s32.totalorder %v526_v10, 0  ;;  %v443_v33 = vadd.s32 1, %v903_v23  ;;  %vm253_vm6 = vweird.f32 %v667_v15 }
  0x70   :  { %v146_v6 = vxor.u32 2147483648, %v564_v0  ;;  %v344_v48 = vsel %vm527_vm1, 0, %v526_v10  ;;  %vm442_vm2 = vc.u32 %v898_v19, %v902_v22  ;;  %vm260_vm3 = vcmp.eq.s32.totalorder %v255_v53, 2 }
  0x71   :  { %v150_v16 = vsel %vm148_vm0, %v149_v3, %v564_v0  ;;  %v345_v28 = vsub.s32 32, %v344_v48  ;;  %v346_v21 = vshll.u32 %v337_v42, %v344_v48  ;;  %v349_v40 = vsub.s32 4294967266, %v344_v48 }
  0x72   :  { %v147_v2 = vsel %vm145_vm9, %v562_v27, %v146_v6  ;;  %v444_v14 = vsel %vm442_vm2, %v443_v33, %v903_v23  ;;  %vm257_vm4 = vcmp.eq.s32.totalorder %v255_v53, 0  ;;  %vm256_vm5 = vcmp.lt.s32.totalorder %v255_v53, 2 }
  0x73   :  { %v151_v46 = vsel %vm144_vm10, %v147_v2, %v150_v16  ;;  %v347_v31 = vshrl.u32 %v329_v8, %v345_v28  ;;  %v350_v32 = vadd.s32 127, %v349_v40  ;;  %v445_v9 = vadd.s32 %v444_v14, %v440_v30 }
  0x74   :  { %v152_v25 = vsel %vm141_vm11, nan, %v151_v46  ;;  %vm275_vm7 = vcmp.lt.s32.totalorder %v673_v24, 0  ;;  %v359_v56 = vsub.s32 4, %v839_v29  ;;  %vm274_vm8 = vcmp.le.f32.partialorder %v273_v4, 0.7853982 }
  0x75   :  { %154 = vst [vmem:[#allocation7 + $0x8] sm:$0xff] %v152_v25  ;;  %v348_v35 = vor.u32 %v347_v31, %v346_v21  ;;  %v351_v45 = vshll.u32 %v350_v32, 23  ;;  %v446_v42 = vadd.s32 536870912, %v445_v9  ;;  %v441_v60 = vadd.s32 %v902_v22, %v898_v19 }
  0x76   :  { %v566_v36 = vpop.eup %565  ;;  %v360_v15 = vsel %vm275_vm7, %v359_v56, %v839_v29  ;;  %vm365_vm13 = vweird.f32 %v673_v24  ;;  %vm387_vm14 = vcmp.lt.s32.totalorder %v678_v38, 0  ;;  %vm386_vm15 = vcmp.le.f32.partialorder %v385_v57, 0.7853982 }
  0x77   :  { %v568_v47 = vpop.eup %567  ;;  %v261_v37 = vxor.u32 2147483648, %v566_v36  ;;  %v352_v49 = vor.u32 4788187, %v351_v45  ;;  %v355_v39 = vcvt.s32.f32 %v348_v35  ;;  %v447_v50 = vshrl.u32 %v446_v42, 30 }
  0x78   :  { %v258_v51 = vxor.u32 2147483648, %v568_v47  ;;  %v362_v26 = vsel %vm274_vm8, 0, %v360_v15 }
  0x79   :  { %v262_v20 = vsel %vm260_vm3, %v261_v37, %v568_v47  ;;  %v353_v44 = vand.u32 2147483647, %v352_v49  ;;  %v448_v34 = vshll.u32 %v447_v50, 30  ;;  %v366_v7 = vadd.s32 3, %v362_v26 }
  0x7a   :  { %v259_v13 = vsel %vm257_vm4, %v566_v36, %v258_v51  ;;  %v471_v28 = vsub.s32 4, %v447_v50  ;;  %vm477_vm3 = vweird.f32 %v678_v38 }
  0x7b   :  { %v263_v52 = vsel %vm256_vm5, %v259_v13, %v262_v20  ;;  %v356_v54 = vmul.f32 %v355_v39, %v353_v44  ;;  %v449_v61 = vsub.s32 %v445_v9, %v448_v34  ;;  %v367_v4 = vand.u32 3, %v366_v7 }
  0x7c   :  { %v264_v58 = vsel %vm253_vm6, nan, %v263_v52  ;;  %v472_v53 = vsel %vm387_vm14, %v471_v28, %v447_v50 }
  0x7d   :  { %266 = vst [vmem:[#allocation7 + $0x10] sm:$0xff] %v264_v58  ;;  %v357_v59 = vxor.u32 2147483648, %v356_v54  ;;  %v451_v63 = vsub.s32 0, %v449_v61  ;;  %vm372_vm10 = vcmp.eq.s32.totalorder %v367_v4, 2  ;;  %vm369_vm11 = vcmp.eq.s32.totalorder %v367_v4, 0 }
  0x7e   :  { %vm368_vm12 = vcmp.lt.s32.totalorder %v367_v4, 2 }
  0x7f   :  { %v358_v62 = vsel %vm275_vm7, %v357_v59, %v356_v54  ;;  %v531_v41 = vmin.u32 %v451_v63, %v449_v61 }
  0x80   :  { %v361_v43 = vsel %vm274_vm8, %v673_v24, %v358_v62  ;;  %v474_v24 = vsel %vm386_vm15, 0, %v472_v53 }
  0x81   :  { %569 = vcosq.f32 %v361_v43  ;;  %v453_v27 = vclz %v531_v41  ;;  %v478_v31 = vadd.s32 3, %v474_v24 }
  0x82   :  { %571 = vsinq.f32 %v361_v43 }
  0x83   :  { %v532_v12 = vadd.s32 4294967294, %v453_v27  ;;  %v479_v32 = vand.u32 3, %v478_v31 }
  0x85   :  { %vm533_vm9 = vcmp.lt.s32.totalorder %v532_v12, 0  ;;  %vm484_vm0 = vcmp.eq.s32.totalorder %v479_v32, 2  ;;  %vm481_vm1 = vcmp.eq.s32.totalorder %v479_v32, 0  ;;  %vm480_vm2 = vcmp.lt.s32.totalorder %v479_v32, 2 }
  0x86   :  { %v456_v0 = vsel %vm533_vm9, 0, %v532_v12 }
  0x87   :  { %v457_v3 = vsub.s32 32, %v456_v0  ;;  %v458_v5 = vshll.u32 %v449_v61, %v456_v0  ;;  %v461_v1 = vsub.s32 4294967266, %v456_v0 }
  0x89   :  { %v459_v55 = vshrl.u32 %v441_v60, %v457_v3  ;;  %v462_v29 = vadd.s32 127, %v461_v1 }
  0x8b   :  { %v460_v8 = vor.u32 %v459_v55, %v458_v5  ;;  %v463_v10 = vshll.u32 %v462_v29, 23 }
  0x8d   :  { %v464_v18 = vor.u32 4788187, %v463_v10  ;;  %v467_v2 = vcvt.s32.f32 %v460_v8 }
  0x8e   :  { %v570_v6 = vpop.eup %569 }
  0x8f   :  { %v572_v11 = vpop.eup %571  ;;  %v373_v16 = vxor.u32 2147483648, %v570_v6  ;;  %v465_v23 = vand.u32 2147483647, %v464_v18 }
  0x90   :  { %v370_v17 = vxor.u32 2147483648, %v572_v11 }
  0x91   :  { %v374_v19 = vsel %vm372_vm10, %v373_v16, %v572_v11  ;;  %v468_v25 = vmul.f32 %v467_v2, %v465_v23 }
  0x92   :  { %v371_v22 = vsel %vm369_vm11, %v570_v6, %v370_v17 }
  0x93   :  { %v375_v46 = vsel %vm368_vm12, %v371_v22, %v374_v19  ;;  %v469_v21 = vxor.u32 2147483648, %v468_v25 }
  0x94   :  { %v376_v48 = vsel %vm365_vm13, nan, %v375_v46 }
  0x95   :  { %378 = vst [vmem:[#allocation7 + $0x18] sm:$0xff] %v376_v48  ;;  %v470_v40 = vsel %vm387_vm14, %v469_v21, %v468_v25 }
  0x96   :  { %v473_v30 = vsel %vm386_vm15, %v678_v38, %v470_v40 }
  0x97   :  { %573 = vcosq.f32 %v473_v30 }
  0x98   :  { %575 = vsinq.f32 %v473_v30 }
  0xa4   :  { %v574_v33 = vpop.eup %573 }
  0xa5   :  { %v576_v35 = vpop.eup %575  ;;  %v485_v45 = vxor.u32 2147483648, %v574_v33 }
  0xa6   :  { %v482_v14 = vxor.u32 2147483648, %v576_v35 }
  0xa7   :  { %v486_v57 = vsel %vm484_vm0, %v485_v45, %v576_v35 }
  0xa8   :  { %v483_v36 = vsel %vm481_vm1, %v574_v33, %v482_v14 }
  0xa9   :  { %v487_v9 = vsel %vm480_vm2, %v483_v36, %v486_v57 }
  0xaa   :  { %v488_v47 = vsel %vm477_vm3, nan, %v487_v9 }
  0xab   :  { %490 = vst [vmem:[#allocation7 + $0x20] sm:$0xff] %v488_v47 }
  0xac   :  { %616 = shalt.err (!%p613_p9)
}
  0xad   :  { %s640_s28 = smov 128   ;;  %s641_s29 = smov 8  }
  0xae   :  { %502 = dma.vmem_to_hbm [thread:$0]  %s497_s26, 640, %s931_s2, [#allocation4], %s640_s28, %s640_s28, %s641_s29  }
  0xaf   :  { %629 = dma.done.wait [#allocation4], 640  }
  0xb0   :  { %630 = vsyncadd [#allocation4], 4294966656 }
  0xb1   :  { %506 = vsyncpa [#allocation3], 1 }
  0xb2   :  { %507 = vsyncpa [#allocation4], 1 }
  0xb3   :  { %508 = vsyncpa [#allocation5], 1 }

</bundles_post_ra>
